<compile_context>
chip_gen: v6e
topology: v6e:2x2x1
jax: 0.10.0
libtpu: 0.0.40
codegen_flags: <defaults>
</compile_context>

<pallas_src>
import jax
import jax.numpy as jnp
from jax import lax
from jax.experimental import pallas as pl
from jax.experimental.pallas import tpu as pltpu


def _round_up(x, m):
    return (x + m - 1) // m * m


def _distance_kernel(t_ref, s_ref, tsq_ref, ssq_ref, o_ref):
    # t_ref: (TQ, Dp), s_ref: (TN, Dp), tsq_ref: (TQ, 1), ssq_ref: (1, TN)
    # Fold the -2 into the small (TQ, Dp) operand (cheap VPU mul) so the
    # epilogue on the (TQ, TN) tile is just two broadcast adds.
    t_scaled = t_ref[...] * jnp.asarray(-2.0, dtype=t_ref.dtype)
    cross = lax.dot_general(                    # MXU, f32 accumulation
        t_scaled, s_ref[...],
        dimension_numbers=(((1,), (1,)), ((), ())),
        preferred_element_type=jnp.float32,
    )                                           # (TQ, TN) = -2 * t . s^T
    dist = tsq_ref[...] + ssq_ref[...] + cross
    # The norm expansion can go slightly negative from cancellation; the
    # reference (t - s)^2 sum is always >= 0, so clamp.
    o_ref[...] = jnp.maximum(dist, 0.0).astype(o_ref.dtype)


def distance(s, t, *, tq_max=512, tn_max=1024):
    """Pairwise squared Euclidean distance; output (q, n) = (t.shape[0], s.shape[0])."""
    n, d = s.shape
    q, d2 = t.shape
    assert d == d2, "feature dims must match"

    # MXU / lane aligned padded shapes and tile sizes.
    d_pad = _round_up(d, 128)                    # contraction dim multiple of 128
    tq = min(tq_max, _round_up(q, 8))            # sublane-aligned query tile
    tn = min(tn_max, _round_up(n, 128))          # lane-dense support tile
    q_pad = _round_up(q, tq)
    n_pad = _round_up(n, tn)

    # Zero padding is correctness-free: padded rows/features contribute 0 to
    # both the dot product and the norms; padded output entries are sliced off.
    t_p = jnp.pad(t, ((0, q_pad - q), (0, d_pad - d)))
    s_p = jnp.pad(s, ((0, n_pad - n), (0, d_pad - d)))

    # Hoist the row-norm reductions out of the tiled (q, n) loop; accumulate
    # in f32 regardless of input dtype.
    t_sq = jnp.sum(t_p.astype(jnp.float32) ** 2, axis=1, keepdims=True)  # (q_pad, 1)
    s_sq = jnp.sum(s_p.astype(jnp.float32) ** 2, axis=1)[None, :]        # (1, n_pad)

    grid = (q_pad // tq, n_pad // tn)
    in_itemsize = jnp.dtype(t.dtype).itemsize
    cost = pl.CostEstimate(
        flops=2 * q_pad * n_pad * d_pad,
        transcendentals=0,
        bytes_accessed=(q_pad * d_pad + n_pad * d_pad) * in_itemsize
        + (q_pad + n_pad) * 4
        + q_pad * n_pad * 4,
    )

    out = pl.pallas_call(
        _distance_kernel,
        out_shape=jax.ShapeDtypeStruct((q_pad, n_pad), jnp.float32),
        grid=grid,
        in_specs=[
            pl.BlockSpec((tq, d_pad), lambda i, j: (i, 0)),   # t tile
            pl.BlockSpec((tn, d_pad), lambda i, j: (j, 0)),   # s tile
            pl.BlockSpec((tq, 1), lambda i, j: (i, 0)),       # ||t||^2
            pl.BlockSpec((1, tn), lambda i, j: (0, j)),       # ||s||^2
        ],
        out_specs=pl.BlockSpec((tq, tn), lambda i, j: (i, j)),
        compiler_params=pltpu.CompilerParams(
            dimension_semantics=("parallel", "parallel"),
        ),
        cost_estimate=cost,
    )(t_p, s_p, t_sq, s_sq)

    return out[:q, :n]


def _distance_ref(s, t):
    # Literal transcription of the PyTorch forward (broadcast diff, sum, transpose).
    diff = t[None, :, :] - s[:, None, :]          # (n, q, d)
    return jnp.sum(diff * diff, axis=2).T          # (q, n)


if __name__ == "__main__":
    key = jax.random.PRNGKey(0)
    k_s, k_t, k_s2, k_t2 = jax.random.split(key, 4)

    # Case 1: the module's toy shapes (support=8, query=16, hidden=32).
    n, q, d = 8, 16, 32
    s = jax.random.normal(k_s, (n, d), dtype=jnp.float32)
    t = jax.random.normal(k_t, (q, d), dtype=jnp.float32)
    out = jax.block_until_ready(distance(s, t))
    ref = _distance_ref(s, t)
    assert out.shape == (q, n), f"bad shape {out.shape}"
    assert jnp.allclose(out, ref, rtol=1e-4, atol=1e-3), "mismatch vs reference (case 1)"

    # Case 2: small shapes but forced multi-tile grid (exercises index_maps,
    # padding and the 2-D parallel grid path).
    n2, q2, d2 = 200, 24, 40
    s2 = jax.random.normal(k_s2, (n2, d2), dtype=jnp.float32)
    t2 = jax.random.normal(k_t2, (q2, d2), dtype=jnp.float32)
    out2 = jax.block_until_ready(distance(s2, t2, tq_max=8, tn_max=128))
    ref2 = _distance_ref(s2, t2)
    assert out2.shape == (q2, n2), f"bad shape {out2.shape}"
    assert jnp.allclose(out2, ref2, rtol=1e-4, atol=1e-3), "mismatch vs reference (case 2)"

    print("KERNEL_OK")
</pallas_src>

<mosaic_0001>
module attributes {stable_mosaic.version = 11 : i64} {
  func.func @_distance_kernel(%arg0: i32, %arg1: i32, %arg2: memref<16x128xf32, #tpu.memory_space<vmem>>, %arg3: memref<128x128xf32, #tpu.memory_space<vmem>>, %arg4: memref<16x1xf32, #tpu.memory_space<vmem>>, %arg5: memref<1x128xf32, #tpu.memory_space<vmem>>, %arg6: memref<16x128xf32, #tpu.memory_space<vmem>>) attributes {dimension_semantics = [#tpu.dimension_semantics<parallel>, #tpu.dimension_semantics<parallel>], iteration_bounds = array<i64: 1, 1>, scalar_prefetch = 0 : i64, scratch_operands = 0 : i64, tpu.core_type = #tpu.core_type<tc>, window_params = [{transform_indices = @transform_0, window_bounds = array<i64: 16, 128>}, {transform_indices = @transform_1, window_bounds = array<i64: 128, 128>}, {transform_indices = @transform_2, window_bounds = array<i64: 16, 1>}, {transform_indices = @transform_3, window_bounds = array<i64: 1, 128>}, {transform_indices = @transform_4, window_bounds = array<i64: 16, 128>}]} {
    %c0 = arith.constant 0 : index
    %c0_0 = arith.constant 0 : index
    %0 = vector.load %arg2[%c0, %c0_0] : memref<16x128xf32, #tpu.memory_space<vmem>>, vector<16x128xf32>
    %cst = arith.constant -2.000000e+00 : f32
    %1 = vector.broadcast %cst : f32 to vector<16x128xf32>
    %2 = arith.mulf %0, %1 : vector<16x128xf32>
    %c0_1 = arith.constant 0 : index
    %c0_2 = arith.constant 0 : index
    %3 = vector.load %arg3[%c0_1, %c0_2] : memref<128x128xf32, #tpu.memory_space<vmem>>, vector<128x128xf32>
    %cst_3 = arith.constant dense<0.000000e+00> : vector<16x128xf32>
    %4 = tpu.matmul %2, %3, %cst_3 {dimension_numbers = #tpu.dot_dimension_numbers<[1], [1], [0], [0], [0, 0, 1, 0], [], []>} : vector<16x128xf32>, vector<128x128xf32>, vector<16x128xf32> -> vector<16x128xf32>
    %c0_4 = arith.constant 0 : index
    %c0_5 = arith.constant 0 : index
    %5 = vector.load %arg4[%c0_4, %c0_5] : memref<16x1xf32, #tpu.memory_space<vmem>>, vector<16x1xf32>
    %c0_6 = arith.constant 0 : index
    %c0_7 = arith.constant 0 : index
    %6 = vector.load %arg5[%c0_6, %c0_7] : memref<1x128xf32, #tpu.memory_space<vmem>>, vector<1x128xf32>
    %7 = vector.broadcast %5 : vector<16x1xf32> to vector<16x128xf32>
    %8 = vector.broadcast %6 : vector<1x128xf32> to vector<16x128xf32>
    %9 = arith.addf %7, %8 : vector<16x128xf32>
    %10 = arith.addf %9, %4 : vector<16x128xf32>
    %cst_8 = arith.constant 0.000000e+00 : f32
    %11 = vector.broadcast %cst_8 : f32 to vector<16x128xf32>
    %12 = arith.maximumf %10, %11 : vector<16x128xf32>
    %c0_9 = arith.constant 0 : index
    %c0_10 = arith.constant 0 : index
    %13 = vector.load %arg6[%c0_9, %c0_10] : memref<16x128xf32, #tpu.memory_space<vmem>>, vector<16x128xf32>
    tpu.vector_store %arg6[%c0_9, %c0_10], %12 {strides = array<i32>} : memref<16x128xf32, #tpu.memory_space<vmem>>, vector<16x128xf32>,
    return
  }
  func.func @transform_0(%arg0: i32, %arg1: i32) -> (i32, i32) {
    %c0_i32 = arith.constant 0 : i32
    %c0_i32_0 = arith.constant 0 : i32
    return %arg0, %c0_i32 : i32, i32
  }
  func.func @transform_1(%arg0: i32, %arg1: i32) -> (i32, i32) {
    %c0_i32 = arith.constant 0 : i32
    %c0_i32_0 = arith.constant 0 : i32
    return %arg1, %c0_i32 : i32, i32
  }
  func.func @transform_2(%arg0: i32, %arg1: i32) -> (i32, i32) {
    %c0_i32 = arith.constant 0 : i32
    %c0_i32_0 = arith.constant 0 : i32
    return %arg0, %c0_i32 : i32, i32
  }
  func.func @transform_3(%arg0: i32, %arg1: i32) -> (i32, i32) {
    %c0_i32 = arith.constant 0 : i32
    %c0_i32_0 = arith.constant 0 : i32
    return %c0_i32, %arg1 : i32, i32
  }
  func.func @transform_4(%arg0: i32, %arg1: i32) -> (i32, i32) {
    %c0_i32 = arith.constant 0 : i32
    return %arg0, %arg1 : i32, i32
  }
}

</mosaic_0001>

<bundles_post_ra>
// kernel: tpu_custom_call.1
= control target key start
LH: loop header
LB: loop body
LE: loop exit
PB: predicated region body
PF: predicated region fallthrough
CT: control target
= control target key end

     0   :  { %9 = vsyncpa [#allocation3], 0  ;;  %s332_s0 = inlined_call_operand.vmem [shape: f32[16,128], index: 0, kind: input, shape index: {}]   ;;  %s333_s1 = inlined_call_operand.hbm [shape: f32[128,128], index: 1, kind: input, shape index: {}]   ;;  %s334_s2 = inlined_call_operand.vmem [shape: f32[16,1], index: 2, kind: input, shape index: {}]   ;;  %s335_s3 = inlined_call_operand.vmem [shape: f32[1,128], index: 3, kind: input, shape index: {}]   ;;  %s336_s4 = inlined_call_operand.hbm [shape: f32[16,128], index: 4, kind: output, shape index: {}]  }
   0x1   :  { %10 = vsyncpa [#allocation4], 0  ;;  %s275_s15 = smov [#allocation2]  }
   0x2   :  { %s18_s16 = sshll.u32 %s275_s15, 4  ;;  %s19_s16 = int_to_ptr.vmem [resolvable:$true] %s18_s16 }
   0x3   :  { %s239_s17 = scalar_lea.vmem %s19_s16, 2048  ;;  %p244_p1 = scmp.lt.s32.totalorder %s19_s16, %s19_s16 }
   0x4   :  { %p240_p0 = scmp.ne.s32.totalorder %s19_s16, %s239_s17  ;;  %p245_p2 = scmp.lt.s32.totalorder %s239_s17, %s239_s17 }
   0x6   :  { %p246_p3 = por %p245_p2, %p244_p1 }
   0x8   :  { %p247_p4 = pnand %p246_p3, %p240_p0 }
   0xa   :  { %250 = shalt.err (!%p247_p4)
}
   0xb   :  { %s276_s18 = smov 128   ;;  %s277_s19 = smov 8  }
   0xc   :  { %24 = dma.hbm_to_vmem [thread:$0]  %s333_s1, 2048, %s19_s16, [#allocation3], %s276_s18, %s276_s18, %s277_s19  }
   0xd   :  { %271 = dma.done.wait [#allocation3], 2048  }
   0xe   :  { %272 = vsyncadd [#allocation3], 4294965248  ;;  %v278_v0 = vmov 0   ;;  %v51_v1 = vld [vmem:[#allocation2 + $0x78] sm:$0xff]  ;;  %v50_v2 = vld [vmem:[#allocation2 + $0x70] sm:$0xff]  ;;  %s279_s30 = smov [#allocation5]  }
   0xf   :  { %230 = vset.pattern.permute.xlu0 %v278_v0  ;;  %190 = vmatprep.subr.mxu0 %v51_v1  ;;  %v49_v3 = vld [vmem:[#allocation2 + $0x68] sm:$0xff]  ;;  %v32_v4 = vld [vmem:[%s332_s0] sm:$0xff]  ;;  %v47_v9 = vld [vmem:[#allocation2 + $0x58] sm:$0xff]  ;;  %s159_s5 = sshll.u32 %s279_s30, 4  ;;  %s160_s5 = int_to_ptr.vmem [resolvable:$true] %s159_s5 }
  0x10   :  { %191 = vmatpush3.xpose.msra.mxu0 %v51_v1  ;;  %v34_v5 = vmul.f32 -2.0, %v32_v4  ;;  %v127_v6 = vld [vmem:[%s334_s2] sm:$0xff]  ;;  %v128_v8 = vld [vmem:[%s334_s2 + $0x8] sm:$0xff]  ;;  %v46_v10 = vld [vmem:[#allocation2 + $0x50] sm:$0xff]  ;;  %p256_p6 = scmp.lt.s32.totalorder %s160_s5, %s160_s5 }
  0x11   :  { %192 = vmatprep.subr.mxu0 %v50_v2  ;;  %132 = vperm.xlu0 %230, %v127_v6   ;;  %v48_v7 = vld [vmem:[#allocation2 + $0x60] sm:$0xff]  ;;  %v45_v11 = vld [vmem:[#allocation2 + $0x48] sm:$0xff]  ;;  %v43_v13 = vld [vmem:[#allocation2 + $0x38] sm:$0xff] }
  0x12   :  { %222 = vmatprep.mubr.f32.mxu0 %v34_v5  ;;  %v44_v12 = vld [vmem:[#allocation2 + $0x40] sm:$0xff]  ;;  %v42_v14 = vld [vmem:[#allocation2 + $0x30] sm:$0xff]  ;;  %v41_v15 = vld [vmem:[#allocation2 + $0x28] sm:$0xff] }
  0x13   :  { %v40_v16 = vld [vmem:[#allocation2 + $0x20] sm:$0xff]  ;;  %v39_v17 = vld [vmem:[#allocation2 + $0x18] sm:$0xff]  ;;  %v38_v18 = vld [vmem:[#allocation2 + $0x10] sm:$0xff] }
  0x14   :  { %193 = vmatpush3.xpose.msra.mxu0 %v50_v2  ;;  %v37_v19 = vld [vmem:[#allocation2 + $0x8] sm:$0xff]  ;;  %v36_v20 = vld [vmem:[#allocation2] sm:$0xff] }
  0x15   :  { %194 = vmatprep.subr.mxu0 %v49_v3  ;;  %137 = vperm.xlu0 %230, %v128_v8   ;;  %v33_v21 = vld [vmem:[%s332_s0 + $0x8] sm:$0xff]  ;;  %v171_v24 = vld [vmem:[%s335_s3] ss:$0 sm:$0xff]  ;;  %s251_s0 = scalar_lea.vmem %s160_s5, 256 }
  0x16   :  { %v35_v22 = vmul.f32 -2.0, %v33_v21  ;;  %p252_p5 = scmp.ne.s32.totalorder %s160_s5, %s251_s0  ;;  %p257_p7 = scmp.lt.s32.totalorder %s251_s0, %s251_s0 }
  0x18   :  { %195 = vmatpush3.xpose.msra.mxu0 %v49_v3  ;;  %p258_p8 = por %p257_p7, %p256_p6 }
  0x19   :  { %196 = vmatprep.subr.mxu0 %v48_v7 }
  0x1a   :  { %p259_p9 = pnand %p258_p8, %p252_p5 }
  0x1c   :  { %197 = vmatpush3.xpose.msra.mxu0 %v48_v7 }
  0x1d   :  { %198 = vmatprep.subr.mxu0 %v47_v9 }
  0x20   :  { %199 = vmatpush3.xpose.msra.mxu0 %v47_v9 }
  0x21   :  { %200 = vmatprep.subr.mxu0 %v46_v10 }
  0x24   :  { %201 = vmatpush3.xpose.msra.mxu0 %v46_v10 }
  0x25   :  { %202 = vmatprep.subr.mxu0 %v45_v11 }
  0x28   :  { %203 = vmatpush3.xpose.msra.mxu0 %v45_v11 }
  0x29   :  { %204 = vmatprep.subr.mxu0 %v44_v12 }
  0x2c   :  { %205 = vmatpush3.xpose.msra.mxu0 %v44_v12 }
  0x2d   :  { %206 = vmatprep.subr.mxu0 %v43_v13 }
  0x30   :  { %207 = vmatpush3.xpose.msra.mxu0 %v43_v13 }
  0x31   :  { %208 = vmatprep.subr.mxu0 %v42_v14 }
  0x34   :  { %209 = vmatpush3.xpose.msra.mxu0 %v42_v14 }
  0x35   :  { %210 = vmatprep.subr.mxu0 %v41_v15 }
  0x38   :  { %211 = vmatpush3.xpose.msra.mxu0 %v41_v15 }
  0x39   :  { %212 = vmatprep.subr.mxu0 %v40_v16 }
  0x3c   :  { %213 = vmatpush3.xpose.msra.mxu0 %v40_v16 }
  0x3d   :  { %214 = vmatprep.subr.mxu0 %v39_v17 }
  0x40   :  { %215 = vmatpush3.xpose.msra.mxu0 %v39_v17 }
  0x41   :  { %216 = vmatprep.subr.mxu0 %v38_v18 }
  0x44   :  { %217 = vmatpush3.xpose.msra.mxu0 %v38_v18 }
  0x45   :  { %218 = vmatprep.subr.mxu0 %v37_v19 }
  0x48   :  { %219 = vmatpush3.xpose.msra.mxu0 %v37_v19 }
  0x49   :  { %220 = vmatprep.subr.mxu0 %v36_v20 }
  0x4c   :  { %221 = vmatpush3.xpose.msra.mxu0 %v36_v20 }
  0x4f   :  { %223 = vmatmul.mubr.f32.vlgmr.msra.gmra.mxu0 %v35_v22 }
  0x8c   :  { %v133_v23 = vpop.permute.xlu0 %132 }
  0x8d   :  { %v146_v28 = vadd.f32 %v171_v24, %v133_v23 }
  0x90   :  { %v138_v25 = vpop.permute.xlu0 %137 }
  0x91   :  { %v147_v26 = vadd.f32 %v171_v24, %v138_v25 }
 0x10f   :  { %v224_v27 = vpop.f32.mrf.mxu0 }
 0x110   :  { %v149_v29 = vadd.f32 %v224_v27, %v147_v26 }
 0x111   :  { %v118_v30 = vpop.f32.mrf.mxu0 }
 0x112   :  { %v151_v31 = vmax.f32 %v149_v29, 0.0  ;;  %v148_v32 = vadd.f32 %v146_v28, %v118_v30 }
 0x114   :  { %153 = vst [vmem:[#allocation5 + $0x8] sm:$0xff] %v151_v31  ;;  %v150_v33 = vmax.f32 %v148_v32, 0.0 }
 0x116   :  { %152 = vst [vmem:[#allocation5] sm:$0xff] %v150_v33 }
 0x117   :  { %262 = shalt.err (!%p259_p9)
}
 0x118   :  { %165 = dma.vmem_to_hbm [thread:$0]  %s160_s5, 256, %s336_s4, [#allocation4], %s276_s18, %s276_s18, %s277_s19  }
 0x119   :  { %273 = dma.done.wait [#allocation4], 256  }
 0x11a   :  { %274 = vsyncadd [#allocation4], 4294967040 }
 0x11b   :  { %169 = vsyncpa [#allocation3], 1 }
 0x11c   :  { %170 = vsyncpa [#allocation4], 1 }

</bundles_post_ra>
